<compile_context>
chip_gen: v6e
topology: v6e:2x2x1
jax: 0.10.0
libtpu: 0.0.40
codegen_flags: <defaults>
</compile_context>

<pallas_src>
import math

import jax
import jax.numpy as jnp
from jax.experimental import pallas as pl
from jax.experimental.pallas import tpu as pltpu


_UNROLL = 8  # static inner unroll of the gather / DMA-issue loop (tb is a multiple of 8)


def _round_up(x, m):
    return ((x + m - 1) // m) * m


def _vmem_capacity_bytes():
    """Per-generation VMEM capacity; conservative v7x fallback if the query fails."""
    try:
        info = pltpu.get_tpu_info()
        cap = getattr(info, "vmem_capacity_bytes", None)
        if cap:
            return int(cap)
    except Exception:
        pass
    return 64 * 1024 * 1024


def _tile_loss(u, p, n, gamma_blk, base, tb, batch):
    """Shared per-tile loss math.  u/p/n: (tb, D) f32, gamma_blk: (tb, 2) logits."""
    inv_b = 1.0 / float(batch)
    inv_2b = 0.5 / float(batch)
    unk_pos = float((1e-5 - 1.0) ** 2)   # (1e-5 - label)^2 for label = 1
    unk_neg = float(1e-5 ** 2)           # (1e-5 - label)^2 for label = 0

    # Mask rows past the true batch size (padded tail rows gather row 0 / logit 0).
    row_ids = base + jax.lax.broadcasted_iota(jnp.int32, (tb, 1), 0)
    valid = (row_ids < batch).astype(jnp.float32)

    pos_gamma = jax.nn.sigmoid(gamma_blk[:, 0:1])   # (tb, 1)
    neg_gamma = jax.nn.sigmoid(gamma_blk[:, 1:2])   # (tb, 1)

    pos_rating = jax.nn.sigmoid(jnp.sum(u * p, axis=-1, keepdims=True))
    neg_rating = jax.nn.sigmoid(jnp.sum(u * n, axis=-1, keepdims=True))

    # Single fused cross-lane reduction for the L2 regularizer.
    reg_row = jnp.sum(u * u + p * p + n * n, axis=-1, keepdims=True)
    wmf_row = (pos_gamma * jnp.square(pos_rating - 1.0)
               + neg_gamma * jnp.square(neg_rating))
    unk_row = (1.0 - pos_gamma) * unk_pos + (1.0 - neg_gamma) * unk_neg

    # loss = sum(wmf)/(2B) + 0.1*sum(unk)/(2B) + 0.01*0.5*sum(reg)/B
    per_row = inv_2b * (wmf_row + 0.1 * unk_row) + (0.005 * inv_b) * reg_row
    return jnp.sum(valid * per_row)


def _make_resident_kernel(batch, tb):
    """Fast path: embedding tables resident in VMEM, gather via dynamic vector loads."""

    def kernel(users_ref, pos_ref, neg_ref,      # SMEM scalar-prefetch, (Bpad,) int32
               u_tbl, i_tbl,                     # VMEM, whole tables (resident blocks)
               gamma_ref,                        # VMEM (tb, 2) gamma logits
               out_ref,                          # VMEM (1, 1, 1) per-tile partial loss
               u_buf, p_buf, n_buf):             # VMEM gather scratch
        base = pl.multiple_of(pl.program_id(0) * tb, 8)

        @pl.loop(0, tb // _UNROLL)
        def _gather(c):
            r0 = pl.multiple_of(c * _UNROLL, _UNROLL)
            for j in range(_UNROLL):             # static unroll: loads co-issue
                r = r0 + j
                row = base + r
                u_buf[pl.ds(r, 1), :] = u_tbl[pl.ds(users_ref[row], 1), :]
                p_buf[pl.ds(r, 1), :] = i_tbl[pl.ds(pos_ref[row], 1), :]
                n_buf[pl.ds(r, 1), :] = i_tbl[pl.ds(neg_ref[row], 1), :]

        tile_loss = _tile_loss(u_buf[...], p_buf[...], n_buf[...],
                               gamma_ref[...], base, tb, batch)
        out_ref[...] = jnp.broadcast_to(tile_loss, (1, 1, 1))

    return kernel


def _make_hbm_gather_kernel(batch, tb):
    """Fallback path: tables stay in HBM; one row DMA per (user, pos, neg) row."""

    def kernel(users_ref, pos_ref, neg_ref,      # SMEM scalar-prefetch, (Bpad,) int32
               u_hbm, i_hbm,                     # HBM (pl.ANY) embedding tables
               gamma_ref,                        # VMEM (tb, 2) gamma logits
               out_ref,                          # VMEM (1, 1, 1) per-tile partial loss
               u_buf, p_buf, n_buf, sems):       # VMEM scratch + DMA semaphores
        base = pl.multiple_of(pl.program_id(0) * tb, 8)

        # ---- issue all row DMAs for this tile (deep DMA queue, unrolled issue) ----
        @pl.loop(0, tb // _UNROLL)
        def _issue(c):
            r0 = pl.multiple_of(c * _UNROLL, _UNROLL)
            for j in range(_UNROLL):             # static unroll: descriptor pushes co-issue
                r = r0 + j
                row = base + r
                pltpu.make_async_copy(u_hbm.at[pl.ds(users_ref[row], 1), :],
                                      u_buf.at[pl.ds(r, 1), :], sems.at[0]).start()
                pltpu.make_async_copy(i_hbm.at[pl.ds(pos_ref[row], 1), :],
                                      p_buf.at[pl.ds(r, 1), :], sems.at[1]).start()
                pltpu.make_async_copy(i_hbm.at[pl.ds(neg_ref[row], 1), :],
                                      n_buf.at[pl.ds(r, 1), :], sems.at[2]).start()

        # ---- aggregated waits: tb row copies of (1, D) == one (tb, D) buffer in bytes,
        #      so a single full-buffer wait per semaphore drains all of them. ----
        pltpu.make_async_copy(u_buf, u_buf, sems.at[0]).wait()
        pltpu.make_async_copy(p_buf, p_buf, sems.at[1]).wait()
        pltpu.make_async_copy(n_buf, n_buf, sems.at[2]).wait()

        tile_loss = _tile_loss(u_buf[...], p_buf[...], n_buf[...],
                               gamma_ref[...], base, tb, batch)
        out_ref[...] = jnp.broadcast_to(tile_loss, (1, 1, 1))

    return kernel


def exmf_loss_pallas(users, positive_items, negative_items,
                     user_table, item_table, gamma_pairs,
                     *, tile_rows=None, force_hbm_gather=False):
    """users/pos/neg: (B,) int32; user_table: (U, D) f32; item_table: (I, D) f32;
    gamma_pairs: (B, 2) f32 logits.  Returns the scalar EXMF loss."""
    batch = users.shape[0]
    d = user_table.shape[1]

    # ---- per-generation VMEM budget (v5e/v6e: 128 MiB phys, v7x: 64 MiB) ----
    vmem_cap = _vmem_capacity_bytes()
    vmem_limit = int(min((vmem_cap * 3) // 4, 96 * 1024 * 1024))
    table_bytes = (int(user_table.size) + int(item_table.size)) * user_table.dtype.itemsize
    resident = (not force_hbm_gather) and (table_bytes <= vmem_limit // 2)

    # ---- derive tile size from the remaining VMEM budget ----
    if tile_rows is None:
        gather_budget = (vmem_limit - (table_bytes if resident else 0)) // 2
        tile_rows = int(gather_budget // (3 * d * 4))
        tile_rows = max(8, min(2048, tile_rows))
    tile_rows = max(8, int(tile_rows))

    num_tiles = -(-batch // tile_rows)                 # balanced tiles => padding < 8 rows/tile
    tb = _round_up(-(-batch // num_tiles), 8)
    b_pad = num_tiles * tb

    users = users.astype(jnp.int32)
    positive_items = positive_items.astype(jnp.int32)
    negative_items = negative_items.astype(jnp.int32)
    gamma_pairs = gamma_pairs.astype(jnp.float32)
    user_table = user_table.astype(jnp.float32)
    item_table = item_table.astype(jnp.float32)

    pad = b_pad - batch
    if pad:
        users = jnp.pad(users, (0, pad))               # pad with index 0 (valid row)
        positive_items = jnp.pad(positive_items, (0, pad))
        negative_items = jnp.pad(negative_items, (0, pad))
        gamma_pairs = jnp.pad(gamma_pairs, ((0, pad), (0, 0)))

    gamma_spec = pl.BlockSpec((tb, 2), lambda i, *_: (i, 0))
    out_spec = pl.BlockSpec((1, 1, 1), lambda i, *_: (i, 0, 0))
    gather_scratch = [pltpu.VMEM((tb, d), jnp.float32) for _ in range(3)]

    if resident:
        kernel = _make_resident_kernel(batch, tb)
        nu, ni = user_table.shape[0], item_table.shape[0]
        in_specs = [
            pl.BlockSpec((nu, d), lambda i, *_: (0, 0)),   # whole user table, resident
            pl.BlockSpec((ni, d), lambda i, *_: (0, 0)),   # whole item table, resident
            gamma_spec,
        ]
        scratch_shapes = gather_scratch
    else:
        kernel = _make_hbm_gather_kernel(batch, tb)
        in_specs = [
            pl.BlockSpec(memory_space=pl.ANY),             # user table stays in HBM
            pl.BlockSpec(memory_space=pl.ANY),             # item table stays in HBM
            gamma_spec,
        ]
        scratch_shapes = gather_scratch + [pltpu.SemaphoreType.DMA((3,))]

    grid_spec = pltpu.PrefetchScalarGridSpec(
        num_scalar_prefetch=3,                             # users / pos / neg indices -> SMEM
        grid=(num_tiles,),
        in_specs=in_specs,
        out_specs=out_spec,
        scratch_shapes=scratch_shapes,
    )

    partials = pl.pallas_call(
        kernel,
        out_shape=jax.ShapeDtypeStruct((num_tiles, 1, 1), jnp.float32),
        grid_spec=grid_spec,
        compiler_params=pltpu.CompilerParams(
            dimension_semantics=("parallel",),             # tiles independent -> both TCs on v7x
            vmem_limit_bytes=vmem_limit,
        ),
    )(users, positive_items, negative_items, user_table, item_table, gamma_pairs)

    return jnp.sum(partials)


class EXMFParams:
    """Deterministically initialized parameters mirroring the PyTorch __init__."""

    def __init__(self, num_users, num_items, embedding_dim, key):
        self.num_users = num_users
        self.num_items = num_items
        self.embedding_dim = embedding_dim
        stdv = 1.0 / math.sqrt(embedding_dim)
        ku, ki, kg = jax.random.split(key, 3)
        self.user_embedding = jax.random.uniform(
            ku, (num_users, embedding_dim), jnp.float32, minval=-stdv, maxval=stdv)
        self.item_embedding = jax.random.uniform(
            ki, (num_items, embedding_dim), jnp.float32, minval=-stdv, maxval=stdv)
        self.gamma = jax.random.normal(kg, (num_users, num_items), jnp.float32)


def exmf_forward(params: EXMFParams, users, positive_items, negative_items,
                 *, tile_rows=None, force_hbm_gather=False):
    users = users.astype(jnp.int32)
    positive_items = positive_items.astype(jnp.int32)
    negative_items = negative_items.astype(jnp.int32)

    # Tiny (B, 2) gamma-logit gather stays in plain JAX; the (B, D) embedding rows
    # are gathered inside the kernel (VMEM-resident tables or HBM row DMAs).
    pg = params.gamma[users, positive_items]
    ng = params.gamma[users, negative_items]
    gamma_pairs = jnp.stack([pg, ng], axis=-1).astype(jnp.float32)   # (B, 2)

    return exmf_loss_pallas(users, positive_items, negative_items,
                            params.user_embedding, params.item_embedding,
                            gamma_pairs, tile_rows=tile_rows,
                            force_hbm_gather=force_hbm_gather)


def _reference_loss(params, users, positive_items, negative_items):
    """Pure-JAX reference mirroring the PyTorch forward."""
    u = params.user_embedding[users]
    p = params.item_embedding[positive_items]
    n = params.item_embedding[negative_items]
    B = u.shape[0]
    reg = 0.5 * (jnp.sum(u * u) + jnp.sum(p * p) + jnp.sum(n * n)) / B
    pr = jax.nn.sigmoid(jnp.sum(u * p, -1))
    nr = jax.nn.sigmoid(jnp.sum(u * n, -1))
    pg = jax.nn.sigmoid(params.gamma[users, positive_items])
    ng = jax.nn.sigmoid(params.gamma[users, negative_items])
    rating = jnp.stack((pr, nr), 0)
    label = jnp.stack((jnp.ones(B), jnp.zeros(B)), 0)
    gamma = jnp.stack((pg, ng), 0)
    wmf = jnp.mean(gamma * jnp.square(rating - label))
    unk = jnp.mean((1 - gamma) * jnp.square(1e-5 - label))
    return wmf + 0.1 * unk + 0.01 * reg


if __name__ == "__main__":
    key = jax.random.PRNGKey(0)
    k_params, k_u, k_p, k_n = jax.random.split(key, 4)

    num_users, num_items, embedding_dim = 16, 32, 32
    batch = 10   # deliberately not a multiple of 8 -> exercises tail masking

    params = EXMFParams(num_users, num_items, embedding_dim, k_params)

    users = jax.random.randint(k_u, (batch,), 0, num_users, dtype=jnp.int32)
    positive_items = jax.random.randint(k_p, (batch,), 0, num_items, dtype=jnp.int32)
    negative_items = jax.random.randint(k_n, (batch,), 0, num_items, dtype=jnp.int32)

    ref = _reference_loss(params, users, positive_items, negative_items)

    # 1) Resident-table fast path, single tile (tb = 16, padded batch).
    loss = exmf_forward(params, users, positive_items, negative_items)
    loss = jax.block_until_ready(loss)
    assert jnp.allclose(loss, ref, rtol=1e-5, atol=1e-6), (loss, ref)

    # 2) Resident-table path, multi-tile (tb = 8 -> 2 tiles, masked tail, parallel axis).
    loss_tiled = exmf_forward(params, users, positive_items, negative_items,
                              tile_rows=8)
    loss_tiled = jax.block_until_ready(loss_tiled)
    assert jnp.allclose(loss_tiled, ref, rtol=1e-5, atol=1e-6), (loss_tiled, ref)

    # 3) HBM row-DMA gather fallback (aggregated waits + unrolled issue), multi-tile.
    loss_hbm = exmf_forward(params, users, positive_items, negative_items,
                            tile_rows=8, force_hbm_gather=True)
    loss_hbm = jax.block_until_ready(loss_hbm)
    assert jnp.allclose(loss_hbm, ref, rtol=1e-5, atol=1e-6), (loss_hbm, ref)

    print("KERNEL_OK")
</pallas_src>

<mosaic_0001>
module attributes {stable_mosaic.version = 11 : i64} {
  func.func @kernel(%arg0: i32, %arg1: memref<16xi32, #tpu.memory_space<smem>>, %arg2: memref<16xi32, #tpu.memory_space<smem>>, %arg3: memref<16xi32, #tpu.memory_space<smem>>, %arg4: memref<16x32xf32, #tpu.memory_space<vmem>>, %arg5: memref<32x32xf32, #tpu.memory_space<vmem>>, %arg6: memref<16x2xf32, #tpu.memory_space<vmem>>, %arg7: memref<1x1x1xf32, #tpu.memory_space<vmem>>, %arg8: memref<16x32xf32, #tpu.memory_space<vmem>>, %arg9: memref<16x32xf32, #tpu.memory_space<vmem>>, %arg10: memref<16x32xf32, #tpu.memory_space<vmem>>) attributes {dimension_semantics = [#tpu.dimension_semantics<parallel>], iteration_bounds = array<i64: 1>, scalar_prefetch = 3 : i64, scratch_operands = 3 : i64, tpu.core_type = #tpu.core_type<tc>, window_params = [{pipeline_mode = #tpu.pipeline_mode<synchronous>, transform_indices = @transform_0, window_bounds = array<i64: 16, 32>}, {pipeline_mode = #tpu.pipeline_mode<synchronous>, transform_indices = @transform_1, window_bounds = array<i64: 32, 32>}, {transform_indices = @transform_2, window_bounds = array<i64: 16, 2>}, {transform_indices = @transform_3, window_bounds = array<i64: 1, 1, 1>}]} {
    %c16_i32 = arith.constant 16 : i32
    %0 = arith.muli %arg0, %c16_i32 : i32
    %1 = tpu.assume_multiple %0, 8 : i32
    %c0_i32 = arith.constant 0 : i32
    %c2_i32 = arith.constant 2 : i32
    %2 = arith.addi %c0_i32, %c2_i32 : i32
    %c1_i32 = arith.constant 1 : i32
    scf.for %arg11 = %c0_i32 to %2 step %c1_i32  : i32 {
      %c1_i32_26 = arith.constant 1 : i32
      %80 = arith.muli %arg11, %c1_i32_26 : i32
      %c0_i32_27 = arith.constant 0 : i32
      %81 = arith.addi %c0_i32_27, %80 : i32
      %c8_i32 = arith.constant 8 : i32
      %82 = arith.muli %81, %c8_i32 : i32
      %83 = tpu.assume_multiple %82, 8 : i32
      %c0_i32_28 = arith.constant 0 : i32
      %84 = arith.addi %83, %c0_i32_28 : i32
      %85 = arith.addi %1, %84 : i32
      %86 = arith.index_cast %85 : i32 to index
      %87 = memref.load %arg1[%86] : memref<16xi32, #tpu.memory_space<smem>>
      %88 = arith.index_cast %87 : i32 to index
      %c0_29 = arith.constant 0 : index
      %89 = vector.load %arg4[%88, %c0_29] : memref<16x32xf32, #tpu.memory_space<vmem>>, vector<1x32xf32>
      %90 = arith.index_cast %84 : i32 to index
      %c0_30 = arith.constant 0 : index
      %91 = vector.load %arg8[%90, %c0_30] : memref<16x32xf32, #tpu.memory_space<vmem>>, vector<1x32xf32>
      tpu.vector_store %arg8[%90, %c0_30], %89 {strides = array<i32>} : memref<16x32xf32, #tpu.memory_space<vmem>>, vector<1x32xf32>,
      %92 = arith.index_cast %85 : i32 to index
      %93 = memref.load %arg2[%92] : memref<16xi32, #tpu.memory_space<smem>>
      %94 = arith.index_cast %93 : i32 to index
      %c0_31 = arith.constant 0 : index
      %95 = vector.load %arg5[%94, %c0_31] : memref<32x32xf32, #tpu.memory_space<vmem>>, vector<1x32xf32>
      %96 = arith.index_cast %84 : i32 to index
      %c0_32 = arith.constant 0 : index
      %97 = vector.load %arg9[%96, %c0_32] : memref<16x32xf32, #tpu.memory_space<vmem>>, vector<1x32xf32>
      tpu.vector_store %arg9[%96, %c0_32], %95 {strides = array<i32>} : memref<16x32xf32, #tpu.memory_space<vmem>>, vector<1x32xf32>,
      %98 = arith.index_cast %85 : i32 to index
      %99 = memref.load %arg3[%98] : memref<16xi32, #tpu.memory_space<smem>>
      %100 = arith.index_cast %99 : i32 to index
      %c0_33 = arith.constant 0 : index
      %101 = vector.load %arg5[%100, %c0_33] : memref<32x32xf32, #tpu.memory_space<vmem>>, vector<1x32xf32>
      %102 = arith.index_cast %84 : i32 to index
      %c0_34 = arith.constant 0 : index
      %103 = vector.load %arg10[%102, %c0_34] : memref<16x32xf32, #tpu.memory_space<vmem>>, vector<1x32xf32>
      tpu.vector_store %arg10[%102, %c0_34], %101 {strides = array<i32>} : memref<16x32xf32, #tpu.memory_space<vmem>>, vector<1x32xf32>,
      %c1_i32_35 = arith.constant 1 : i32
      %104 = arith.addi %83, %c1_i32_35 : i32
      %105 = arith.addi %1, %104 : i32
      %106 = arith.index_cast %105 : i32 to index
      %107 = memref.load %arg1[%106] : memref<16xi32, #tpu.memory_space<smem>>
      %108 = arith.index_cast %107 : i32 to index
      %c0_36 = arith.constant 0 : index
      %109 = vector.load %arg4[%108, %c0_36] : memref<16x32xf32, #tpu.memory_space<vmem>>, vector<1x32xf32>
      %110 = arith.index_cast %104 : i32 to index
      %c0_37 = arith.constant 0 : index
      %111 = vector.load %arg8[%110, %c0_37] : memref<16x32xf32, #tpu.memory_space<vmem>>, vector<1x32xf32>
      tpu.vector_store %arg8[%110, %c0_37], %109 {strides = array<i32>} : memref<16x32xf32, #tpu.memory_space<vmem>>, vector<1x32xf32>,
      %112 = arith.index_cast %105 : i32 to index
      %113 = memref.load %arg2[%112] : memref<16xi32, #tpu.memory_space<smem>>
      %114 = arith.index_cast %113 : i32 to index
      %c0_38 = arith.constant 0 : index
      %115 = vector.load %arg5[%114, %c0_38] : memref<32x32xf32, #tpu.memory_space<vmem>>, vector<1x32xf32>
      %116 = arith.index_cast %104 : i32 to index
      %c0_39 = arith.constant 0 : index
      %117 = vector.load %arg9[%116, %c0_39] : memref<16x32xf32, #tpu.memory_space<vmem>>, vector<1x32xf32>
      tpu.vector_store %arg9[%116, %c0_39], %115 {strides = array<i32>} : memref<16x32xf32, #tpu.memory_space<vmem>>, vector<1x32xf32>,
      %118 = arith.index_cast %105 : i32 to index
      %119 = memref.load %arg3[%118] : memref<16xi32, #tpu.memory_space<smem>>
      %120 = arith.index_cast %119 : i32 to index
      %c0_40 = arith.constant 0 : index
      %121 = vector.load %arg5[%120, %c0_40] : memref<32x32xf32, #tpu.memory_space<vmem>>, vector<1x32xf32>
      %122 = arith.index_cast %104 : i32 to index
      %c0_41 = arith.constant 0 : index
      %123 = vector.load %arg10[%122, %c0_41] : memref<16x32xf32, #tpu.memory_space<vmem>>, vector<1x32xf32>
      tpu.vector_store %arg10[%122, %c0_41], %121 {strides = array<i32>} : memref<16x32xf32, #tpu.memory_space<vmem>>, vector<1x32xf32>,
      %c2_i32_42 = arith.constant 2 : i32
      %124 = arith.addi %83, %c2_i32_42 : i32
      %125 = arith.addi %1, %124 : i32
      %126 = arith.index_cast %125 : i32 to index
      %127 = memref.load %arg1[%126] : memref<16xi32, #tpu.memory_space<smem>>
      %128 = arith.index_cast %127 : i32 to index
      %c0_43 = arith.constant 0 : index
      %129 = vector.load %arg4[%128, %c0_43] : memref<16x32xf32, #tpu.memory_space<vmem>>, vector<1x32xf32>
      %130 = arith.index_cast %124 : i32 to index
      %c0_44 = arith.constant 0 : index
      %131 = vector.load %arg8[%130, %c0_44] : memref<16x32xf32, #tpu.memory_space<vmem>>, vector<1x32xf32>
      tpu.vector_store %arg8[%130, %c0_44], %129 {strides = array<i32>} : memref<16x32xf32, #tpu.memory_space<vmem>>, vector<1x32xf32>,
      %132 = arith.index_cast %125 : i32 to index
      %133 = memref.load %arg2[%132] : memref<16xi32, #tpu.memory_space<smem>>
      %134 = arith.index_cast %133 : i32 to index
      %c0_45 = arith.constant 0 : index
      %135 = vector.load %arg5[%134, %c0_45] : memref<32x32xf32, #tpu.memory_space<vmem>>, vector<1x32xf32>
      %136 = arith.index_cast %124 : i32 to index
      %c0_46 = arith.constant 0 : index
      %137 = vector.load %arg9[%136, %c0_46] : memref<16x32xf32, #tpu.memory_space<vmem>>, vector<1x32xf32>
      tpu.vector_store %arg9[%136, %c0_46], %135 {strides = array<i32>} : memref<16x32xf32, #tpu.memory_space<vmem>>, vector<1x32xf32>,
      %138 = arith.index_cast %125 : i32 to index
      %139 = memref.load %arg3[%138] : memref<16xi32, #tpu.memory_space<smem>>
      %140 = arith.index_cast %139 : i32 to index
      %c0_47 = arith.constant 0 : index
      %141 = vector.load %arg5[%140, %c0_47] : memref<32x32xf32, #tpu.memory_space<vmem>>, vector<1x32xf32>
      %142 = arith.index_cast %124 : i32 to index
      %c0_48 = arith.constant 0 : index
      %143 = vector.load %arg10[%142, %c0_48] : memref<16x32xf32, #tpu.memory_space<vmem>>, vector<1x32xf32>
      tpu.vector_store %arg10[%142, %c0_48], %141 {strides = array<i32>} : memref<16x32xf32, #tpu.memory_space<vmem>>, vector<1x32xf32>,
      %c3_i32 = arith.constant 3 : i32
      %144 = arith.addi %83, %c3_i32 : i32
      %145 = arith.addi %1, %144 : i32
      %146 = arith.index_cast %145 : i32 to index
      %147 = memref.load %arg1[%146] : memref<16xi32, #tpu.memory_space<smem>>
      %148 = arith.index_cast %147 : i32 to index
      %c0_49 = arith.constant 0 : index
      %149 = vector.load %arg4[%148, %c0_49] : memref<16x32xf32, #tpu.memory_space<vmem>>, vector<1x32xf32>
      %150 = arith.index_cast %144 : i32 to index
      %c0_50 = arith.constant 0 : index
      %151 = vector.load %arg8[%150, %c0_50] : memref<16x32xf32, #tpu.memory_space<vmem>>, vector<1x32xf32>
      tpu.vector_store %arg8[%150, %c0_50], %149 {strides = array<i32>} : memref<16x32xf32, #tpu.memory_space<vmem>>, vector<1x32xf32>,
      %152 = arith.index_cast %145 : i32 to index
      %153 = memref.load %arg2[%152] : memref<16xi32, #tpu.memory_space<smem>>
      %154 = arith.index_cast %153 : i32 to index
      %c0_51 = arith.constant 0 : index
      %155 = vector.load %arg5[%154, %c0_51] : memref<32x32xf32, #tpu.memory_space<vmem>>, vector<1x32xf32>
      %156 = arith.index_cast %144 : i32 to index
      %c0_52 = arith.constant 0 : index
      %157 = vector.load %arg9[%156, %c0_52] : memref<16x32xf32, #tpu.memory_space<vmem>>, vector<1x32xf32>
      tpu.vector_store %arg9[%156, %c0_52], %155 {strides = array<i32>} : memref<16x32xf32, #tpu.memory_space<vmem>>, vector<1x32xf32>,
      %158 = arith.index_cast %145 : i32 to index
      %159 = memref.load %arg3[%158] : memref<16xi32, #tpu.memory_space<smem>>
      %160 = arith.index_cast %159 : i32 to index
      %c0_53 = arith.constant 0 : index
      %161 = vector.load %arg5[%160, %c0_53] : memref<32x32xf32, #tpu.memory_space<vmem>>, vector<1x32xf32>
      %162 = arith.index_cast %144 : i32 to index
      %c0_54 = arith.constant 0 : index
      %163 = vector.load %arg10[%162, %c0_54] : memref<16x32xf32, #tpu.memory_space<vmem>>, vector<1x32xf32>
      tpu.vector_store %arg10[%162, %c0_54], %161 {strides = array<i32>} : memref<16x32xf32, #tpu.memory_space<vmem>>, vector<1x32xf32>,
      %c4_i32 = arith.constant 4 : i32
      %164 = arith.addi %83, %c4_i32 : i32
      %165 = arith.addi %1, %164 : i32
      %166 = arith.index_cast %165 : i32 to index
      %167 = memref.load %arg1[%166] : memref<16xi32, #tpu.memory_space<smem>>
      %168 = arith.index_cast %167 : i32 to index
      %c0_55 = arith.constant 0 : index
      %169 = vector.load %arg4[%168, %c0_55] : memref<16x32xf32, #tpu.memory_space<vmem>>, vector<1x32xf32>
      %170 = arith.index_cast %164 : i32 to index
      %c0_56 = arith.constant 0 : index
      %171 = vector.load %arg8[%170, %c0_56] : memref<16x32xf32, #tpu.memory_space<vmem>>, vector<1x32xf32>
      tpu.vector_store %arg8[%170, %c0_56], %169 {strides = array<i32>} : memref<16x32xf32, #tpu.memory_space<vmem>>, vector<1x32xf32>,
      %172 = arith.index_cast %165 : i32 to index
      %173 = memref.load %arg2[%172] : memref<16xi32, #tpu.memory_space<smem>>
      %174 = arith.index_cast %173 : i32 to index
      %c0_57 = arith.constant 0 : index
      %175 = vector.load %arg5[%174, %c0_57] : memref<32x32xf32, #tpu.memory_space<vmem>>, vector<1x32xf32>
      %176 = arith.index_cast %164 : i32 to index
      %c0_58 = arith.constant 0 : index
      %177 = vector.load %arg9[%176, %c0_58] : memref<16x32xf32, #tpu.memory_space<vmem>>, vector<1x32xf32>
      tpu.vector_store %arg9[%176, %c0_58], %175 {strides = array<i32>} : memref<16x32xf32, #tpu.memory_space<vmem>>, vector<1x32xf32>,
      %178 = arith.index_cast %165 : i32 to index
      %179 = memref.load %arg3[%178] : memref<16xi32, #tpu.memory_space<smem>>
      %180 = arith.index_cast %179 : i32 to index
      %c0_59 = arith.constant 0 : index
      %181 = vector.load %arg5[%180, %c0_59] : memref<32x32xf32, #tpu.memory_space<vmem>>, vector<1x32xf32>
      %182 = arith.index_cast %164 : i32 to index
      %c0_60 = arith.constant 0 : index
      %183 = vector.load %arg10[%182, %c0_60] : memref<16x32xf32, #tpu.memory_space<vmem>>, vector<1x32xf32>
      tpu.vector_store %arg10[%182, %c0_60], %181 {strides = array<i32>} : memref<16x32xf32, #tpu.memory_space<vmem>>, vector<1x32xf32>,
      %c5_i32 = arith.constant 5 : i32
      %184 = arith.addi %83, %c5_i32 : i32
      %185 = arith.addi %1, %184 : i32
      %186 = arith.index_cast %185 : i32 to index
      %187 = memref.load %arg1[%186] : memref<16xi32, #tpu.memory_space<smem>>
      %188 = arith.index_cast %187 : i32 to index
      %c0_61 = arith.constant 0 : index
      %189 = vector.load %arg4[%188, %c0_61] : memref<16x32xf32, #tpu.memory_space<vmem>>, vector<1x32xf32>
      %190 = arith.index_cast %184 : i32 to index
      %c0_62 = arith.constant 0 : index
      %191 = vector.load %arg8[%190, %c0_62] : memref<16x32xf32, #tpu.memory_space<vmem>>, vector<1x32xf32>
      tpu.vector_store %arg8[%190, %c0_62], %189 {strides = array<i32>} : memref<16x32xf32, #tpu.memory_space<vmem>>, vector<1x32xf32>,
      %192 = arith.index_cast %185 : i32 to index
      %193 = memref.load %arg2[%192] : memref<16xi32, #tpu.memory_space<smem>>
      %194 = arith.index_cast %193 : i32 to index
      %c0_63 = arith.constant 0 : index
      %195 = vector.load %arg5[%194, %c0_63] : memref<32x32xf32, #tpu.memory_space<vmem>>, vector<1x32xf32>
      %196 = arith.index_cast %184 : i32 to index
      %c0_64 = arith.constant 0 : index
      %197 = vector.load %arg9[%196, %c0_64] : memref<16x32xf32, #tpu.memory_space<vmem>>, vector<1x32xf32>
      tpu.vector_store %arg9[%196, %c0_64], %195 {strides = array<i32>} : memref<16x32xf32, #tpu.memory_space<vmem>>, vector<1x32xf32>,
      %198 = arith.index_cast %185 : i32 to index
      %199 = memref.load %arg3[%198] : memref<16xi32, #tpu.memory_space<smem>>
      %200 = arith.index_cast %199 : i32 to index
      %c0_65 = arith.constant 0 : index
      %201 = vector.load %arg5[%200, %c0_65] : memref<32x32xf32, #tpu.memory_space<vmem>>, vector<1x32xf32>
      %202 = arith.index_cast %184 : i32 to index
      %c0_66 = arith.constant 0 : index
      %203 = vector.load %arg10[%202, %c0_66] : memref<16x32xf32, #tpu.memory_space<vmem>>, vector<1x32xf32>
      tpu.vector_store %arg10[%202, %c0_66], %201 {strides = array<i32>} : memref<16x32xf32, #tpu.memory_space<vmem>>, vector<1x32xf32>,
      %c6_i32 = arith.constant 6 : i32
      %204 = arith.addi %83, %c6_i32 : i32
      %205 = arith.addi %1, %204 : i32
      %206 = arith.index_cast %205 : i32 to index
      %207 = memref.load %arg1[%206] : memref<16xi32, #tpu.memory_space<smem>>
      %208 = arith.index_cast %207 : i32 to index
      %c0_67 = arith.constant 0 : index
      %209 = vector.load %arg4[%208, %c0_67] : memref<16x32xf32, #tpu.memory_space<vmem>>, vector<1x32xf32>
      %210 = arith.index_cast %204 : i32 to index
      %c0_68 = arith.constant 0 : index
      %211 = vector.load %arg8[%210, %c0_68] : memref<16x32xf32, #tpu.memory_space<vmem>>, vector<1x32xf32>
      tpu.vector_store %arg8[%210, %c0_68], %209 {strides = array<i32>} : memref<16x32xf32, #tpu.memory_space<vmem>>, vector<1x32xf32>,
      %212 = arith.index_cast %205 : i32 to index
      %213 = memref.load %arg2[%212] : memref<16xi32, #tpu.memory_space<smem>>
      %214 = arith.index_cast %213 : i32 to index
      %c0_69 = arith.constant 0 : index
      %215 = vector.load %arg5[%214, %c0_69] : memref<32x32xf32, #tpu.memory_space<vmem>>, vector<1x32xf32>
      %216 = arith.index_cast %204 : i32 to index
      %c0_70 = arith.constant 0 : index
      %217 = vector.load %arg9[%216, %c0_70] : memref<16x32xf32, #tpu.memory_space<vmem>>, vector<1x32xf32>
      tpu.vector_store %arg9[%216, %c0_70], %215 {strides = array<i32>} : memref<16x32xf32, #tpu.memory_space<vmem>>, vector<1x32xf32>,
      %218 = arith.index_cast %205 : i32 to index
      %219 = memref.load %arg3[%218] : memref<16xi32, #tpu.memory_space<smem>>
      %220 = arith.index_cast %219 : i32 to index
      %c0_71 = arith.constant 0 : index
      %221 = vector.load %arg5[%220, %c0_71] : memref<32x32xf32, #tpu.memory_space<vmem>>, vector<1x32xf32>
      %222 = arith.index_cast %204 : i32 to index
      %c0_72 = arith.constant 0 : index
      %223 = vector.load %arg10[%222, %c0_72] : memref<16x32xf32, #tpu.memory_space<vmem>>, vector<1x32xf32>
      tpu.vector_store %arg10[%222, %c0_72], %221 {strides = array<i32>} : memref<16x32xf32, #tpu.memory_space<vmem>>, vector<1x32xf32>,
      %c7_i32 = arith.constant 7 : i32
      %224 = arith.addi %83, %c7_i32 : i32
      %225 = arith.addi %1, %224 : i32
      %226 = arith.index_cast %225 : i32 to index
      %227 = memref.load %arg1[%226] : memref<16xi32, #tpu.memory_space<smem>>
      %228 = arith.index_cast %227 : i32 to index
      %c0_73 = arith.constant 0 : index
      %229 = vector.load %arg4[%228, %c0_73] : memref<16x32xf32, #tpu.memory_space<vmem>>, vector<1x32xf32>
      %230 = arith.index_cast %224 : i32 to index
      %c0_74 = arith.constant 0 : index
      %231 = vector.load %arg8[%230, %c0_74] : memref<16x32xf32, #tpu.memory_space<vmem>>, vector<1x32xf32>
      tpu.vector_store %arg8[%230, %c0_74], %229 {strides = array<i32>} : memref<16x32xf32, #tpu.memory_space<vmem>>, vector<1x32xf32>,
      %232 = arith.index_cast %225 : i32 to index
      %233 = memref.load %arg2[%232] : memref<16xi32, #tpu.memory_space<smem>>
      %234 = arith.index_cast %233 : i32 to index
      %c0_75 = arith.constant 0 : index
      %235 = vector.load %arg5[%234, %c0_75] : memref<32x32xf32, #tpu.memory_space<vmem>>, vector<1x32xf32>
      %236 = arith.index_cast %224 : i32 to index
      %c0_76 = arith.constant 0 : index
      %237 = vector.load %arg9[%236, %c0_76] : memref<16x32xf32, #tpu.memory_space<vmem>>, vector<1x32xf32>
      tpu.vector_store %arg9[%236, %c0_76], %235 {strides = array<i32>} : memref<16x32xf32, #tpu.memory_space<vmem>>, vector<1x32xf32>,
      %238 = arith.index_cast %225 : i32 to index
      %239 = memref.load %arg3[%238] : memref<16xi32, #tpu.memory_space<smem>>
      %240 = arith.index_cast %239 : i32 to index
      %c0_77 = arith.constant 0 : index
      %241 = vector.load %arg5[%240, %c0_77] : memref<32x32xf32, #tpu.memory_space<vmem>>, vector<1x32xf32>
      %242 = arith.index_cast %224 : i32 to index
      %c0_78 = arith.constant 0 : index
      %243 = vector.load %arg10[%242, %c0_78] : memref<16x32xf32, #tpu.memory_space<vmem>>, vector<1x32xf32>
      tpu.vector_store %arg10[%242, %c0_78], %241 {strides = array<i32>} : memref<16x32xf32, #tpu.memory_space<vmem>>, vector<1x32xf32>,
    }
    %c2_i32_0 = arith.constant 2 : i32
    %c0 = arith.constant 0 : index
    %c0_1 = arith.constant 0 : index
    %3 = vector.load %arg8[%c0, %c0_1] : memref<16x32xf32, #tpu.memory_space<vmem>>, vector<16x32xf32>
    %c0_2 = arith.constant 0 : index
    %c0_3 = arith.constant 0 : index
    %4 = vector.load %arg9[%c0_2, %c0_3] : memref<16x32xf32, #tpu.memory_space<vmem>>, vector<16x32xf32>
    %c0_4 = arith.constant 0 : index
    %c0_5 = arith.constant 0 : index
    %5 = vector.load %arg10[%c0_4, %c0_5] : memref<16x32xf32, #tpu.memory_space<vmem>>, vector<16x32xf32>
    %c0_6 = arith.constant 0 : index
    %c0_7 = arith.constant 0 : index
    %6 = vector.load %arg6[%c0_6, %c0_7] : memref<16x2xf32, #tpu.memory_space<vmem>>, vector<16x2xf32>
    %7 = tpu.iota {dimensions = array<i32: 0>} : vector<16x1xi32>
    %8 = vector.broadcast %1 : i32 to vector<16x1xi32>
    %9 = arith.addi %8, %7 : vector<16x1xi32>
    %c10_i32 = arith.constant 10 : i32
    %10 = vector.broadcast %c10_i32 : i32 to vector<16x1xi32>
    %11 = arith.cmpi slt, %9, %10 : vector<16x1xi32>
    %12 = arith.extui %11 : vector<16x1xi1> to vector<16x1xi32>
    %13 = arith.sitofp %12 : vector<16x1xi32> to vector<16x1xf32>
    %14 = vector.extract_strided_slice %6 {offsets = [0, 0], sizes = [16, 1], strides = [1, 1]} : vector<16x2xf32> to vector<16x1xf32>
    %15 = arith.negf %14 : vector<16x1xf32>
    %16 = math.exp %15 : vector<16x1xf32>
    %cst = arith.constant 1.000000e+00 : f32
    %17 = vector.broadcast %cst : f32 to vector<16x1xf32>
    %18 = arith.addf %17, %16 : vector<16x1xf32>
    %19 = arith.divf %17, %18 : vector<16x1xf32>
    %20 = vector.extract_strided_slice %6 {offsets = [0, 1], sizes = [16, 1], strides = [1, 1]} : vector<16x2xf32> to vector<16x1xf32>
    %21 = arith.negf %20 : vector<16x1xf32>
    %22 = math.exp %21 : vector<16x1xf32>
    %cst_8 = arith.constant 1.000000e+00 : f32
    %23 = vector.broadcast %cst_8 : f32 to vector<16x1xf32>
    %24 = arith.addf %23, %22 : vector<16x1xf32>
    %25 = arith.divf %23, %24 : vector<16x1xf32>
    %26 = arith.mulf %3, %4 : vector<16x32xf32>
    %cst_9 = arith.constant dense<0.000000e+00> : vector<16xf32>
    %27 = vector.multi_reduction <add>, %26, %cst_9 [1] : vector<16x32xf32> to vector<16xf32>
    %28 = vector.shape_cast %27 : vector<16xf32> to vector<16x1xf32>
    %29 = arith.negf %28 : vector<16x1xf32>
    %30 = math.exp %29 : vector<16x1xf32>
    %cst_10 = arith.constant 1.000000e+00 : f32
    %31 = vector.broadcast %cst_10 : f32 to vector<16x1xf32>
    %32 = arith.addf %31, %30 : vector<16x1xf32>
    %33 = arith.divf %31, %32 : vector<16x1xf32>
    %34 = arith.mulf %3, %5 : vector<16x32xf32>
    %cst_11 = arith.constant dense<0.000000e+00> : vector<16xf32>
    %35 = vector.multi_reduction <add>, %34, %cst_11 [1] : vector<16x32xf32> to vector<16xf32>
    %36 = vector.shape_cast %35 : vector<16xf32> to vector<16x1xf32>
    %37 = arith.negf %36 : vector<16x1xf32>
    %38 = math.exp %37 : vector<16x1xf32>
    %cst_12 = arith.constant 1.000000e+00 : f32
    %39 = vector.broadcast %cst_12 : f32 to vector<16x1xf32>
    %40 = arith.addf %39, %38 : vector<16x1xf32>
    %41 = arith.divf %39, %40 : vector<16x1xf32>
    %42 = arith.mulf %3, %3 : vector<16x32xf32>
    %43 = arith.mulf %4, %4 : vector<16x32xf32>
    %44 = arith.addf %42, %43 : vector<16x32xf32>
    %45 = arith.mulf %5, %5 : vector<16x32xf32>
    %46 = arith.addf %44, %45 : vector<16x32xf32>
    %cst_13 = arith.constant dense<0.000000e+00> : vector<16xf32>
    %47 = vector.multi_reduction <add>, %46, %cst_13 [1] : vector<16x32xf32> to vector<16xf32>
    %48 = vector.shape_cast %47 : vector<16xf32> to vector<16x1xf32>
    %cst_14 = arith.constant 1.000000e+00 : f32
    %49 = vector.broadcast %cst_14 : f32 to vector<16x1xf32>
    %50 = arith.subf %33, %49 : vector<16x1xf32>
    %51 = arith.mulf %50, %50 : vector<16x1xf32>
    %52 = arith.mulf %19, %51 : vector<16x1xf32>
    %53 = arith.mulf %41, %41 : vector<16x1xf32>
    %54 = arith.mulf %25, %53 : vector<16x1xf32>
    %55 = arith.addf %52, %54 : vector<16x1xf32>
    %cst_15 = arith.constant 1.000000e+00 : f32
    %56 = vector.broadcast %cst_15 : f32 to vector<16x1xf32>
    %57 = arith.subf %56, %19 : vector<16x1xf32>
    %cst_16 = arith.constant 0.999979972 : f32
    %58 = vector.broadcast %cst_16 : f32 to vector<16x1xf32>
    %59 = arith.mulf %57, %58 : vector<16x1xf32>
    %cst_17 = arith.constant 1.000000e+00 : f32
    %60 = vector.broadcast %cst_17 : f32 to vector<16x1xf32>
    %61 = arith.subf %60, %25 : vector<16x1xf32>
    %cst_18 = arith.constant 1.000000e-10 : f32
    %62 = vector.broadcast %cst_18 : f32 to vector<16x1xf32>
    %63 = arith.mulf %61, %62 : vector<16x1xf32>
    %64 = arith.addf %59, %63 : vector<16x1xf32>
    %cst_19 = arith.constant 1.000000e-01 : f32
    %65 = vector.broadcast %cst_19 : f32 to vector<16x1xf32>
    %66 = arith.mulf %65, %64 : vector<16x1xf32>
    %67 = arith.addf %55, %66 : vector<16x1xf32>
    %cst_20 = arith.constant 5.000000e-02 : f32
    %68 = vector.broadcast %cst_20 : f32 to vector<16x1xf32>
    %69 = arith.mulf %68, %67 : vector<16x1xf32>
    %cst_21 = arith.constant 5.000000e-04 : f32
    %70 = vector.broadcast %cst_21 : f32 to vector<16x1xf32>
    %71 = arith.mulf %70, %48 : vector<16x1xf32>
    %72 = arith.addf %69, %71 : vector<16x1xf32>
    %73 = arith.mulf %13, %72 : vector<16x1xf32>
    %74 = vector.shape_cast %73 : vector<16x1xf32> to vector<1x16x1xf32>
    %cst_22 = arith.constant dense<0.000000e+00> : vector<1xf32>
    %75 = vector.multi_reduction <add>, %74, %cst_22 [1, 2] : vector<1x16x1xf32> to vector<1xf32>
    %76 = vector.shape_cast %75 : vector<1xf32> to vector<1x1x1xf32>
    %77 = vector.extract %76[0, 0, 0] : f32 from vector<1x1x1xf32>
    %78 = vector.broadcast %77 : f32 to vector<1x1x1xf32>
    %c0_23 = arith.constant 0 : index
    %c0_24 = arith.constant 0 : index
    %c0_25 = arith.constant 0 : index
    %79 = vector.load %arg7[%c0_23, %c0_24, %c0_25] : memref<1x1x1xf32, #tpu.memory_space<vmem>>, vector<1x1x1xf32>
    tpu.vector_store %arg7[%c0_23, %c0_24, %c0_25], %78 {strides = array<i32>} : memref<1x1x1xf32, #tpu.memory_space<vmem>>, vector<1x1x1xf32>,
    return
  }
  func.func @transform_0(%arg0: i32, %arg1: memref<16xi32, #tpu.memory_space<smem>>, %arg2: memref<16xi32, #tpu.memory_space<smem>>, %arg3: memref<16xi32, #tpu.memory_space<smem>>) -> (i32, i32) {
    %c0_i32 = arith.constant 0 : i32
    %c0_i32_0 = arith.constant 0 : i32
    %c0_i32_1 = arith.constant 0 : i32
    return %c0_i32, %c0_i32_0 : i32, i32
  }
  func.func @transform_1(%arg0: i32, %arg1: memref<16xi32, #tpu.memory_space<smem>>, %arg2: memref<16xi32, #tpu.memory_space<smem>>, %arg3: memref<16xi32, #tpu.memory_space<smem>>) -> (i32, i32) {
    %c0_i32 = arith.constant 0 : i32
    %c0_i32_0 = arith.constant 0 : i32
    %c0_i32_1 = arith.constant 0 : i32
    return %c0_i32, %c0_i32_0 : i32, i32
  }
  func.func @transform_2(%arg0: i32, %arg1: memref<16xi32, #tpu.memory_space<smem>>, %arg2: memref<16xi32, #tpu.memory_space<smem>>, %arg3: memref<16xi32, #tpu.memory_space<smem>>) -> (i32, i32) {
    %c0_i32 = arith.constant 0 : i32
    %c0_i32_0 = arith.constant 0 : i32
    return %arg0, %c0_i32 : i32, i32
  }
  func.func @transform_3(%arg0: i32, %arg1: memref<16xi32, #tpu.memory_space<smem>>, %arg2: memref<16xi32, #tpu.memory_space<smem>>, %arg3: memref<16xi32, #tpu.memory_space<smem>>) -> (i32, i32, i32) {
    %c0_i32 = arith.constant 0 : i32
    %c0_i32_0 = arith.constant 0 : i32
    %c0_i32_1 = arith.constant 0 : i32
    return %arg0, %c0_i32, %c0_i32_0 : i32, i32, i32
  }
}

</mosaic_0001>

<bundles_post_ra>
// kernel: tpu_custom_call.1
= control target key start
LH: loop header
LB: loop body
LE: loop exit
PB: predicated region body
PF: predicated region fallthrough
CT: control target
= control target key end

     0   :  { %s824_s0 = inlined_call_operand.vmem [shape: s32[16], index: 0, kind: input, shape index: {}]   ;;  %s825_s3 = inlined_call_operand.vmem [shape: f32[16,32], index: 3, kind: input, shape index: {}]   ;;  %s826_s4 = inlined_call_operand.hbm [shape: f32[32,32], index: 4, kind: input, shape index: {}]   ;;  %s827_s5 = inlined_call_operand.vmem [shape: f32[16,2], index: 5, kind: input, shape index: {}]   ;;  %s828_s6 = inlined_call_operand.hbm [shape: f32[1,1,1], index: 6, kind: output, shape index: {}]   ;;  %s829_s1 = inlined_call_operand.vmem [shape: s32[16], index: 1, kind: input, shape index: {}]   ;;  %s830_s2 = inlined_call_operand.vmem [shape: s32[16], index: 2, kind: input, shape index: {}]  }
   0x1   :  { %s11_s23 = sshll.u32 %s824_s0, 4  ;;  %s15_s26 = sshll.u32 %s829_s1, 4  ;;  %s12_s23 = int_to_ptr.vmem [resolvable:$true] %s11_s23  ;;  %s16_s26 = int_to_ptr.vmem [resolvable:$true] %s15_s26 }
   0x2   :  { %s551_s27 = scalar_lea.vmem %s12_s23, 16  ;;  %p556_p1 = scmp.lt.s32.totalorder %s12_s23, %s12_s23 }
   0x3   :  { %p552_p0 = scmp.ne.s32.totalorder %s12_s23, %s551_s27  ;;  %p557_p2 = scmp.lt.s32.totalorder %s551_s27, %s551_s27 }
   0x5   :  { %p558_p3 = por %p557_p2, %p556_p1 }
   0x7   :  { %p559_p4 = pnand %p558_p3, %p552_p0 }
   0x9   :  { %562 = shalt.err (!%p559_p4)  }
   0xa   :  { %s641_s28 = smov [#allocation6]   ;;  %s563_s29 = scalar_lea.vmem %s16_s26, 16 }
   0xb   :  { %14 = dma.vmem_to_smem %s12_s23, 16, %s641_s28, [#allocation5] }
   0xc   :  { %p564_p5 = scmp.ne.s32.totalorder %s16_s26, %s563_s29  ;;  %p568_p6 = scmp.lt.s32.totalorder %s16_s26, %s16_s26 }
   0xd   :  { %p569_p7 = scmp.lt.s32.totalorder %s563_s29, %s563_s29 }
   0xf   :  { %p570_p8 = por %p569_p7, %p568_p6 }
  0x11   :  { %p571_p9 = pnand %p570_p8, %p564_p5 }
  0x13   :  { %574 = shalt.err (!%p571_p9)  }
  0x14   :  { %s642_s0 = smov [#allocation7]   ;;  %s19_s7 = sshll.u32 %s830_s2, 4  ;;  %s20_s7 = int_to_ptr.vmem [resolvable:$true] %s19_s7 }
  0x15   :  { %18 = dma.vmem_to_smem %s16_s26, 16, %s642_s0, [#allocation5] }
  0x16   :  { %s575_s8 = scalar_lea.vmem %s20_s7, 16  ;;  %p580_p11 = scmp.lt.s32.totalorder %s20_s7, %s20_s7 }
  0x17   :  { %p576_p10 = scmp.ne.s32.totalorder %s20_s7, %s575_s8  ;;  %p581_p12 = scmp.lt.s32.totalorder %s575_s8, %s575_s8 }
  0x19   :  { %p582_p13 = por %p581_p12, %p580_p11 }
  0x1b   :  { %p583_p0 = pnand %p582_p13, %p576_p10 }
  0x1d   :  { %586 = shalt.err (!%p583_p0)  }
  0x1e   :  { %s643_s9 = smov [#allocation8]  }
  0x1f   :  { %22 = dma.vmem_to_smem %s20_s7, 16, %s643_s9, [#allocation5] }
  0x20   :  { %631 = dma.done.wait [#allocation5], 48 }
  0x21   :  { %632 = vsyncadd [#allocation5], 4294967248 }
  0x22   :  { %24 = sfence }
  0x23   :  { %25 = vsyncpa [#allocation10], 0 }
  0x24   :  { %26 = vsyncpa [#allocation11], 0  ;;  %s644_s10 = smov [#allocation9]  }
  0x25   :  { %s34_s11 = sshll.u32 %s644_s10, 4  ;;  %s35_s11 = int_to_ptr.vmem [resolvable:$true] %s34_s11 }
  0x26   :  { %s595_s12 = scalar_lea.vmem %s35_s11, 512  ;;  %p600_p2 = scmp.lt.s32.totalorder %s35_s11, %s35_s11 }
  0x27   :  { %p596_p1 = scmp.ne.s32.totalorder %s35_s11, %s595_s12  ;;  %p601_p3 = scmp.lt.s32.totalorder %s595_s12, %s595_s12 }
  0x29   :  { %p602_p4 = por %p601_p3, %p600_p2 }
  0x2b   :  { %p603_p5 = pnand %p602_p4, %p596_p1 }
  0x2d   :  { %606 = shalt.err (!%p603_p5)
}
  0x2e   :  { %s645_s2 = smov 128   ;;  %s646_s13 = smov 8  }
  0x2f   :  { %40 = dma.hbm_to_vmem [thread:$0]  %s826_s4, 512, %s35_s11, [#allocation10], %s645_s2, %s645_s2, %s646_s13  }
  0x30   :  { %633 = dma.done.wait [#allocation10], 512  }
  0x31   :  { %634 = vsyncadd [#allocation10], 4294966784  ;;  %s697_s16 = smov 0  }
  0x32 LB: > { %s703_s17 = sshll.u32 %s639_s16, 3  ;;  %vm59_vm0 = vcmask 253952   ;;  %s52_s16 = sadd.s32 1, %s639_s16   ;;  %s639_s16 = sphi %s697_s16, %s52_s16  }
  0x33   : > { %s55_s4 = sld [smem:[#allocation6 + %s703_s17]]  ;;  %s71_s20 = sadd.s32 1, %s703_s17 }
  0x34   : > { %s61_s18 = sld [smem:[#allocation7 + %s703_s17]]  ;;  %s88_s21 = sadd.s32 2, %s703_s17 }
  0x35   : > { %s66_s19 = sld [smem:[#allocation8 + %s703_s17]]  ;;  %s105_s23 = sadd.s32 3, %s703_s17 }
  0x36   : > { %s73_s22 = sld [smem:[#allocation6 + %s71_s20]]  ;;  %s712_s25 = sadd.s32 4, %s703_s17 }
  0x37   : > { %s78_s24 = sld [smem:[#allocation7 + %s71_s20]]  ;;  %s718_s1 = scalar_lea.vmem [#allocation2], %s703_s17 }
  0x38   : > { %s83_s29 = sld [smem:[#allocation8 + %s71_s20]]  ;;  %s723_s8 = scalar_lea.vmem [#allocation3], %s703_s17 }
  0x39   : > { %s56_s28 = scalar_lea.vmem %s825_s3, %s55_s4  ;;  %s90_s0 = sld [smem:[#allocation6 + %s88_s21]] }
  0x3a   : > { %v57_v0 = vld [vmem:[%s56_s28] sm:$0x1]  ;;  %s62_s30 = scalar_lea.vmem [#allocation9], %s61_s18  ;;  %s95_s7 = sld [smem:[#allocation7 + %s88_s21]] }
  0x3b   : > { %60 = vst.msk [vmem:[%s718_s1] sm:$0x1] %vm59_vm0, %v57_v0  ;;  %v63_v1 = vld [vmem:[%s62_s30] sm:$0x1]  ;;  %s67_s9 = scalar_lea.vmem [#allocation9], %s66_s19  ;;  %s100_s10 = sld [smem:[#allocation8 + %s88_s21]] }
  0x3c   : > { %65 = vst.msk [vmem:[%s723_s8] sm:$0x1] %vm59_vm0, %v63_v1  ;;  %v68_v2 = vld [vmem:[%s67_s9] sm:$0x1]  ;;  %s728_s11 = sadd.s32 5, %s703_s17  ;;  %s731_s12 = scalar_lea.vmem [#allocation4], %s703_s17 }
  0x3d   : > { %70 = vst.msk [vmem:[%s731_s12] sm:$0x1] %vm59_vm0, %v68_v2  ;;  %s74_s14 = scalar_lea.vmem %s825_s3, %s73_s22  ;;  %s107_s15 = sld [smem:[#allocation6 + %s105_s23]] }
  0x3e   : > { %v75_v3 = vld [vmem:[%s74_s14] sm:$0x1]  ;;  %s112_s4 = sld [smem:[#allocation7 + %s105_s23]]  ;;  %s79_s18 = scalar_lea.vmem [#allocation9], %s78_s24 }
  0x3f   : > { %458 = vst.msk [vmem:[%s718_s1 + $0x1] sm:$0x1] %vm59_vm0, %v75_v3  ;;  %v80_v4 = vld [vmem:[%s79_s18] sm:$0x1]  ;;  %s117_s19 = sld [smem:[#allocation8 + %s105_s23]]  ;;  %s84_s20 = scalar_lea.vmem [#allocation9], %s83_s29 }
  0x40   : > { %460 = vst.msk [vmem:[%s723_s8 + $0x1] sm:$0x1] %vm59_vm0, %v80_v4  ;;  %v85_v5 = vld [vmem:[%s84_s20] sm:$0x1]  ;;  %s91_s22 = scalar_lea.vmem %s825_s3, %s90_s0  ;;  %s124_s27 = sld [smem:[#allocation6 + %s712_s25]] }
  0x41   : > { %462 = vst.msk [vmem:[%s731_s12 + $0x1] sm:$0x1] %vm59_vm0, %v85_v5  ;;  %v92_v6 = vld [vmem:[%s91_s22] sm:$0x1]  ;;  %s129_s28 = sld [smem:[#allocation7 + %s712_s25]]  ;;  %s96_s23 = scalar_lea.vmem [#allocation9], %s95_s7 }
  0x42   : > { %464 = vst.msk [vmem:[%s718_s1 + $0x2] sm:$0x1] %vm59_vm0, %v92_v6  ;;  %v97_v7 = vld [vmem:[%s96_s23] sm:$0x1]  ;;  %s134_s24 = sld [smem:[#allocation8 + %s712_s25]]  ;;  %s101_s29 = scalar_lea.vmem [#allocation9], %s100_s10 }
  0x43   : > { %466 = vst.msk [vmem:[%s723_s8 + $0x2] sm:$0x1] %vm59_vm0, %v97_v7  ;;  %v102_v8 = vld [vmem:[%s101_s29] sm:$0x1]  ;;  %s108_s9 = scalar_lea.vmem %s825_s3, %s107_s15  ;;  %s141_s2 = sld [smem:[#allocation6 + %s728_s11]] }
  0x44   : > { %468 = vst.msk [vmem:[%s731_s12 + $0x2] sm:$0x1] %vm59_vm0, %v102_v8  ;;  %v109_v9 = vld [vmem:[%s108_s9] sm:$0x1]  ;;  %s146_s13 = sld [smem:[#allocation7 + %s728_s11]]  ;;  %s113_s25 = scalar_lea.vmem [#allocation9], %s112_s4 }
  0x45   : > { %470 = vst.msk [vmem:[%s718_s1 + $0x3] sm:$0x1] %vm59_vm0, %v109_v9  ;;  %v114_v10 = vld [vmem:[%s113_s25] sm:$0x1]  ;;  %s151_s7 = sld [smem:[#allocation8 + %s728_s11]]  ;;  %s118_s10 = scalar_lea.vmem [#allocation9], %s117_s19 }
  0x46   : > { %472 = vst.msk [vmem:[%s723_s8 + $0x3] sm:$0x1] %vm59_vm0, %v114_v10  ;;  %v119_v11 = vld [vmem:[%s118_s10] sm:$0x1]  ;;  %s125_s15 = scalar_lea.vmem %s825_s3, %s124_s27  ;;  %s156_s20 = sadd.s32 6, %s703_s17 }
  0x47   : > { %474 = vst.msk [vmem:[%s731_s12 + $0x3] sm:$0x1] %vm59_vm0, %v119_v11  ;;  %v126_v12 = vld [vmem:[%s125_s15] sm:$0x1]  ;;  %s158_s21 = sld [smem:[#allocation6 + %s156_s20]]  ;;  %s130_s11 = scalar_lea.vmem [#allocation9], %s129_s28 }
  0x48   : > { %476 = vst.msk [vmem:[%s718_s1 + $0x4] sm:$0x1] %vm59_vm0, %v126_v12  ;;  %v131_v13 = vld [vmem:[%s130_s11] sm:$0x1]  ;;  %s163_s4 = sld [smem:[#allocation7 + %s156_s20]]  ;;  %s135_s19 = scalar_lea.vmem [#allocation9], %s134_s24 }
  0x49   : > { %478 = vst.msk [vmem:[%s723_s8 + $0x4] sm:$0x1] %vm59_vm0, %v131_v13  ;;  %v136_v14 = vld [vmem:[%s135_s19] sm:$0x1]  ;;  %s142_s27 = scalar_lea.vmem %s825_s3, %s141_s2  ;;  %s168_s23 = sld [smem:[#allocation8 + %s156_s20]] }
  0x4a   : > { %480 = vst.msk [vmem:[%s731_s12 + $0x4] sm:$0x1] %vm59_vm0, %v136_v14  ;;  %v143_v15 = vld [vmem:[%s142_s27] sm:$0x1]  ;;  %s173_s29 = sadd.s32 7, %s703_s17  ;;  %s147_s28 = scalar_lea.vmem [#allocation9], %s146_s13 }
  0x4b   : > { %482 = vst.msk [vmem:[%s718_s1 + $0x5] sm:$0x1] %vm59_vm0, %v143_v15  ;;  %v148_v16 = vld [vmem:[%s147_s28] sm:$0x1]  ;;  %s175_s0 = sld [smem:[#allocation6 + %s173_s29]]  ;;  %s152_s24 = scalar_lea.vmem [#allocation9], %s151_s7 }
  0x4c   : > { %484 = vst.msk [vmem:[%s723_s8 + $0x5] sm:$0x1] %vm59_vm0, %v148_v16  ;;  %v153_v17 = vld [vmem:[%s152_s24] sm:$0x1]  ;;  %s180_s30 = sld [smem:[#allocation7 + %s173_s29]]  ;;  %p49_p6 = scmp.ge.s32.totalorder %s52_s16, 2  }
  0x4d   : > { %486 = vst.msk [vmem:[%s731_s12 + $0x5] sm:$0x1] %vm59_vm0, %v153_v17  ;;  %s159_s17 = scalar_lea.vmem %s825_s3, %s158_s21  ;;  %s185_s25 = sld [smem:[#allocation8 + %s173_s29]]  ;;  %vm224_vm1 = vcmask (%p49_p6), 261120   ;;  %v196_v38 = vld [vmem:[%s827_s5] sm:$0xff] (%p49_p6)  ;;  %v197_v42 = vld [vmem:[%s827_s5 + $0x8] sm:$0xff] (%p49_p6) }
  0x4e   : > { %v160_v18 = vld [vmem:[%s159_s17] sm:$0x1]  ;;  %s164_s13 = scalar_lea.vmem [#allocation9], %s163_s4  ;;  %v500_v40 = vmul.f32 (%p49_p6), -1.442695, %v196_v38  ;;  %s647_s5 = smov (%p49_p6), 127  }
  0x4f   : > { %488 = vst.msk [vmem:[%s718_s1 + $0x6] sm:$0x1] %vm59_vm0, %v160_v18  ;;  %v165_v19 = vld [vmem:[%s164_s13] sm:$0x1]  ;;  %s169_s7 = scalar_lea.vmem [#allocation9], %s168_s23  ;;  %vm327_vm3 = vcmask (%p49_p6), 7168  }
  0x50   : > { %490 = vst.msk [vmem:[%s723_s8 + $0x6] sm:$0x1] %vm59_vm0, %v165_v19  ;;  %v170_v20 = vld [vmem:[%s169_s7] sm:$0x1]  ;;  %527 = vpow2.f32 (%p49_p6), %v500_v40  ;;  %v501_v45 = vmul.f32 (%p49_p6), -1.442695, %v197_v42 }
  0x51   : > { %492 = vst.msk [vmem:[%s731_s12 + $0x6] sm:$0x1] %vm59_vm0, %v170_v20  ;;  %s176_s18 = scalar_lea.vmem %s825_s3, %s175_s0  ;;  %51 = sbr.rel (!%p49_p6) target bundleno = 50 (0x32), region = 91  ;;  %vm341_vm4 = vcmask (%p49_p6), 0  }
  0x52   : > { %v177_v21 = vld [vmem:[%s176_s18] sm:$0x1]  ;;  %s181_s15 = scalar_lea.vmem [#allocation9], %s180_s30  ;;  %529 = vpow2.f32 (%p49_p6), %v501_v45 }
  0x53   : > { %494 = vst.msk [vmem:[%s718_s1 + $0x7] sm:$0x1] %vm59_vm0, %v177_v21  ;;  %v182_v22 = vld [vmem:[%s181_s15] sm:$0x1]  ;;  %s186_s20 = scalar_lea.vmem [#allocation9], %s185_s25 }
  0x54   : > { %496 = vst.msk [vmem:[%s723_s8 + $0x7] sm:$0x1] %vm59_vm0, %v182_v22  ;;  %v187_v23 = vld [vmem:[%s186_s20] sm:$0x1] }
  0x55   : > { %498 = vst.msk [vmem:[%s731_s12 + $0x7] sm:$0x1] %vm59_vm0, %v187_v23  ;;  %s649_s12 = smov (%p49_p6), [#allocation12]  }
  0x56   :  { %s349_s21 = sshll.u32 %s649_s12, 4  ;;  %s350_s21 = int_to_ptr.vmem [resolvable:$true] %s349_s21 }
  0x57   :  { %s607_s4 = scalar_lea.vmem %s350_s21, 16  ;;  %s611_s19 = scalar_lea.vmem %s350_s21, 32 }
  0x58   :  { %p608_p7 = scmp.ne.s32.totalorder %s350_s21, %s607_s4  ;;  %p612_p8 = scmp.lt.s32.totalorder %s350_s21, %s350_s21 }
  0x59   :  { %p613_p9 = scmp.lt.s32.totalorder %s611_s19, %s607_s4 }
  0x5a   :  { %v191_v24 = vld [vmem:[#allocation2 + $0x8] sm:$0xff]  ;;  %v190_v26 = vld [vmem:[#allocation2] sm:$0xff] }
  0x5b   :  { %v193_v29 = vld [vmem:[#allocation3 + $0x8] sm:$0xff]  ;;  %v192_v30 = vld [vmem:[#allocation3] sm:$0xff]  ;;  %v264_v41 = vmul.f32 %v191_v24, %v191_v24  ;;  %v263_v44 = vmul.f32 %v190_v26, %v190_v26  ;;  %p614_p10 = por %p613_p9, %p612_p8 }
  0x5c   :  { %v195_v25 = vld [vmem:[#allocation4 + $0x8] sm:$0xff]  ;;  %v194_v28 = vld [vmem:[#allocation4] sm:$0xff]  ;;  %v223_v32 = vmul.f32 %v193_v29, %v191_v24  ;;  %v222_v33 = vmul.f32 %v192_v30, %v190_v26  ;;  %v265_v39 = vmul.f32 %v192_v30, %v192_v30  ;;  %v266_v43 = vmul.f32 %v193_v29, %v193_v29 }
  0x5d   :  { %v244_v27 = vmul.f32 %v195_v25, %v191_v24  ;;  %v243_v31 = vmul.f32 %v194_v28, %v190_v26  ;;  %v270_v46 = vmul.f32 %v195_v25, %v195_v25  ;;  %v269_v48 = vmul.f32 %v194_v28, %v194_v28  ;;  %v528_v54 = vpop.eup %527  ;;  %p615_p11 = pnand %p614_p10, %p608_p7 }
  0x5e   :  { %v228_v35 = vsel %vm224_vm1, %v223_v32, 0.0  ;;  %v225_v37 = vsel %vm224_vm1, %v222_v33, 0.0  ;;  %v267_v47 = vadd.f32 %v265_v39, %v263_v44  ;;  %v268_v50 = vadd.f32 %v266_v43, %v264_v41 }
  0x5f   :  { %v248_v34 = vsel %vm224_vm1, %v244_v27, 0.0  ;;  %v245_v36 = vsel %vm224_vm1, %v243_v31, 0.0  ;;  %229 = vadd.xlane.f32.xlu1 %v228_v35  ;;  %v216_v55 = vadd.f32 1.0, %v528_v54  ;;  %v530_v56 = vpop.eup %529  ;;  %v198_v28 = vlaneseq }
  0x60   :  { %249 = vadd.xlane.f32.xlu0 %v248_v34  ;;  %v271_v49 = vadd.f32 %v269_v48, %v267_v47  ;;  %v272_v52 = vadd.f32 %v270_v46, %v268_v50  ;;  %v217_v57 = vadd.f32 1.0, %v530_v56  ;;  %v648_v50 = vmov 0.0  }
  0x61   :  { %531 = vrcp.f32 %v216_v55  ;;  %v199_v34 = vshrl.u32 %v198_v28, 7 }
  0x62   :  { %v273_v51 = vsel %vm224_vm1, %v271_v49, 0.0  ;;  %v276_v53 = vsel %vm224_vm1, %v272_v52, 0.0  ;;  %533 = vrcp.f32 %v217_v57 }
  0x63   :  { %226 = vadd.xlane.f32.xlu1 %v225_v37  ;;  %v200_v39 = vadd.s32 8, %v199_v34 }
  0x64   :  { %246 = vadd.xlane.f32.xlu0 %v245_v36 }
  0x65   :  { %vm205_vm2 = vcmp.lt.s32.totalorder %v200_v39, 10 }
  0x67   :  { %274 = vadd.xlane.f32.xlu1 %v273_v51  ;;  %v499_v51 = vsel %vm205_vm2, 1.0, %v648_v50 }
  0x68   :  { %277 = vadd.xlane.f32.xlu0 %v276_v53 }
  0x6e   :  { %v532_v58 = vpop.eup %531 }
  0x6f   :  { %v299_v59 = vsub.f32 1.0, %v532_v58  ;;  %v534_v60 = vpop.eup %533 }
  0x70   :  { %v300_v62 = vsub.f32 1.0, %v534_v60 }
  0x71   :  { %v303_v61 = vmul.f32 1e-10, %v299_v59  ;;  %v301_v35 = vmul.f32 0.99998, %v299_v59 }
  0x72   :  { %v304_v63 = vmul.f32 1e-10, %v300_v62  ;;  %v302_v27 = vmul.f32 0.99998, %v300_v62 }
  0x78   :  { %307 = vrot.lane.b32.xlu1 %v303_v61, %s647_s5 }
  0x7e   :  { %309 = vrot.lane.b32.xlu0 %v304_v63, %s647_s5 }
  0xe8   :  { %v230_v14 = vpop.xlane.xlu1 %229 }
  0xe9   :  { %v250_v0 = vpop.xlane.xlu0 %249  ;;  %v503_v15 = vmul.f32 -1.442695, %v230_v14 }
  0xea   :  { %v505_v1 = vmul.f32 -1.442695, %v250_v0 }
  0xec   :  { %535 = vpow2.f32 %v505_v1  ;;  %v227_v16 = vpop.xlane.xlu1 %226 }
  0xed   :  { %v247_v2 = vpop.xlane.xlu0 %246  ;;  %v502_v17 = vmul.f32 -1.442695, %v227_v16 }
  0xee   :  { %v504_v3 = vmul.f32 -1.442695, %v247_v2 }
  0xf0   :  { %537 = vpow2.f32 %v504_v3  ;;  %v275_v24 = vpop.xlane.xlu1 %274 }
  0xf1   :  { %v278_v23 = vpop.xlane.xlu0 %277  ;;  %v321_v54 = vmul.f32 0.0005, %v275_v24 }
  0xf2   :  { %v322_v46 = vmul.f32 0.0005, %v278_v23 }
  0xf4   :  { %v308_v32 = vpop.permute.xlu1 %307 }
  0xf5   :  { %v310_v29 = vpop.permute.xlu0 %309  ;;  %v313_v41 = vadd.f32 %v308_v32, %v301_v35 }
  0xf6   :  { %v314_v33 = vadd.f32 %v310_v29, %v302_v27 }
  0xf7   :  { %v315_v47 = vmul.f32 0.1, %v313_v41 }
  0xf8   :  { %v316_v38 = vmul.f32 0.1, %v314_v33 }
  0xf9   :  { %v536_v4 = vpop.eup %535 }
  0xfa   :  { %v258_v5 = vadd.f32 1.0, %v536_v4 }
  0xfc   :  { %539 = vrcp.f32 %v258_v5 }
  0xfd   :  { %v538_v6 = vpop.eup %537 }
  0xfe   :  { %v257_v7 = vadd.f32 1.0, %v538_v6 }
 0x100   :  { %541 = vrcp.f32 %v257_v7 }
 0x101   :  { %543 = vpow2.f32 %v503_v15 }
 0x102   :  { %545 = vpow2.f32 %v502_v17 }
 0x109   :  { %v540_v8 = vpop.eup %539 }
 0x10a   :  { %v286_v9 = vmul.f32 %v540_v8, %v540_v8 }
 0x10c   :  { %v288_v10 = vmul.f32 %v534_v60, %v286_v9 }
 0x10d   :  { %v542_v11 = vpop.eup %541 }
 0x10e   :  { %293 = vrot.lane.b32.xlu1 %v288_v10, %s647_s5  ;;  %v285_v12 = vmul.f32 %v542_v11, %v542_v11  ;;  %v544_v18 = vpop.eup %543 }
 0x10f   :  { %v238_v19 = vadd.f32 1.0, %v544_v18  ;;  %v546_v20 = vpop.eup %545 }
 0x110   :  { %v287_v13 = vmul.f32 %v532_v58, %v285_v12  ;;  %v237_v21 = vadd.f32 1.0, %v546_v20 }
 0x111   :  { %547 = vrcp.f32 %v238_v19 }
 0x112   :  { %291 = vrot.lane.b32.xlu1 %v287_v13, %s647_s5  ;;  %549 = vrcp.f32 %v237_v21 }
 0x11e   :  { %v548_v22 = vpop.eup %547 }
 0x11f   :  { %v507_v25 = vadd.f32 -1.0, %v548_v22  ;;  %v550_v26 = vpop.eup %549 }
 0x120   :  { %v506_v31 = vadd.f32 -1.0, %v550_v26 }
 0x121   :  { %v282_v30 = vmul.f32 %v507_v25, %v507_v25 }
 0x122   :  { %v281_v37 = vmul.f32 %v506_v31, %v506_v31 }
 0x123   :  { %v284_v36 = vmul.f32 %v534_v60, %v282_v30 }
 0x124   :  { %v283_v43 = vmul.f32 %v532_v58, %v281_v37 }
 0x180   :  { %v294_v40 = vpop.permute.xlu1 %293 }
 0x181   :  { %v298_v42 = vadd.f32 %v294_v40, %v284_v36 }
 0x183   :  { %v318_v44 = vadd.f32 %v316_v38, %v298_v42 }
 0x184   :  { %v292_v45 = vpop.permute.xlu1 %291 }
 0x185   :  { %v320_v48 = vmul.f32 0.05, %v318_v44  ;;  %v297_v49 = vadd.f32 %v292_v45, %v283_v43 }
 0x187   :  { %v324_v52 = vadd.f32 %v322_v46, %v320_v48  ;;  %v317_v53 = vadd.f32 %v315_v47, %v297_v49 }
 0x189   :  { %v319_v55 = vmul.f32 0.05, %v317_v53  ;;  %v326_v56 = vmul.f32 %v499_v51, %v324_v52 }
 0x18b   :  { %v323_v57 = vadd.f32 %v321_v54, %v319_v55  ;;  %v329_v60 = vsel %vm327_vm3, %v326_v56, 0.0 }
 0x18d   :  { %v328_v59 = vsel %vm327_vm3, %v323_v57, 0.0 }
 0x18e   :  { %v330_v61 = vadd.f32 %v329_v60, %v328_v59 }
 0x190   :  { %331 = vadd.xlane.f32.xlu0 %v330_v61 }
 0x219   :  { %v332_v58 = vpop.xlane.xlu0 %331 }
 0x21a   :  { %v333_v62 = vrot.slane %v332_v58, 4 }
 0x21c   :  { %v334_v63 = vadd.f32 %v333_v62, %v332_v58 }
 0x21e   :  { %v335_v0 = vrot.slane %v334_v63, 2 }
 0x220   :  { %v336_v1 = vadd.f32 %v335_v0, %v334_v63 }
 0x222   :  { %v337_v2 = vrot.slane %v336_v1, 1 }
 0x224   :  { %v338_v3 = vadd.f32 %v337_v2, %v336_v1 }
 0x226   :  { %508 = vpush %v338_v3 }
 0x257   :  { %s509_s11 = spop %508 }
 0x258   :  { %v340_v4 = vstv %s509_s11 }
 0x259   :  { %342 = vst.msk [vmem:[#allocation12] sm:$0x1] %vm341_vm4, %v340_v4 }
 0x25a   :  { %618 = shalt.err (!%p615_p11)
}
 0x25b   :  { %352 = dma.vmem_to_hbm [thread:$0]  %s350_s21, 16, %s828_s6, [#allocation11]  }
 0x25c   :  { %635 = dma.done.wait [#allocation11], 16  }
 0x25d   :  { %636 = vsyncadd [#allocation11], 4294967280 }
 0x25e   :  { %356 = vsyncpa [#allocation10], 1 }
 0x25f   :  { %357 = vsyncpa [#allocation11], 1 }

</bundles_post_ra>
